<compile_context>
chip_gen: v7x
topology: tpu7x:2x2x1
jax: 0.10.0
libtpu: 0.0.40
codegen_flags: <defaults>
</compile_context>

<pallas_src>
import functools

import jax
import jax.numpy as jnp
from jax.experimental import pallas as pl
from jax.experimental.pallas import tpu as pltpu

FEAT = 64          # MLP input dim (fixed by the module: Linear(64, 32))
MID = 32           # MLP hidden dim
LANES = 2 * FEAT   # 128 -- two original rows packed per lane-dense row


def _round_up(x, m):
    return ((x + m - 1) // m) * m


# ---------------------------------------------------------------------------
# Kernels (operate on the packed lane-dense layout: one row = two 64-d rows)
# ---------------------------------------------------------------------------
def _ls_mlp_kernel(x_ref, w_ref, w1s_ref, b1s_ref, w2s_ref, o_ref):
    """Packed rows: out = x * (sigmoid(w) + sigmoid(tanh(x @ W1 + b1) @ W2))."""
    x = x_ref[...].astype(jnp.float32)                          # (bm, 128)
    # Block-diagonal stacked weights -> both packed halves in one matmul:
    #   h[:, :32] = tanh(x[:, :64] @ W1 + b1)   (even rows)
    #   h[:, 32:] = tanh(x[:, 64:] @ W1 + b1)   (odd rows)
    h = jnp.tanh(
        jnp.dot(x, w1s_ref[...], preferred_element_type=jnp.float32)
        + b1s_ref[...]
    )                                                           # (bm, 64)
    s = jax.nn.sigmoid(
        jnp.dot(h, w2s_ref[...], preferred_element_type=jnp.float32)
    )                                                           # (bm, 2)
    scale = jax.nn.sigmoid(w_ref[...].astype(jnp.float32)) + s  # (bm, 2)

    bm, lanes = x.shape
    lane = jax.lax.broadcasted_iota(jnp.int32, (bm, lanes), 1)
    scale_full = jnp.where(lane < lanes // 2, scale[:, 0:1], scale[:, 1:2])
    o_ref[...] = (x * scale_full).astype(o_ref.dtype)


def _ls_plain_kernel(x_ref, w_ref, o_ref):
    """Packed rows: out = x * sigmoid(w)."""
    x = x_ref[...].astype(jnp.float32)                          # (bm, 128)
    scale = jax.nn.sigmoid(w_ref[...].astype(jnp.float32))      # (bm, 2)
    bm, lanes = x.shape
    lane = jax.lax.broadcasted_iota(jnp.int32, (bm, lanes), 1)
    scale_full = jnp.where(lane < lanes // 2, scale[:, 0:1], scale[:, 1:2])
    o_ref[...] = (x * scale_full).astype(o_ref.dtype)


# ---------------------------------------------------------------------------
# Wrapper
# ---------------------------------------------------------------------------
@functools.partial(jax.jit, static_argnames=("block_rows", "use_mlp"))
def learnable_scalar_forward(embs, w, w1=None, b1=None, w2=None, *,
                             block_rows=4096, use_mlp=True):
    """Pallas forward of LearnableScalar.

    embs: (N, 64) float (f32 or bf16)
    w:    (N, 1)  float parameter
    w1:   (64, 32), b1: (1, 32), w2: (32, 1)  -- MLP params (used iff use_mlp)
    block_rows: row tile in the packed (N/2, 128) layout (each packed row
                holds two original rows).  Default 4096 packed rows == 2 MiB
                x-block in f32, near the HBM roofline on v5e/v6e/v7x.
    """
    n, d = embs.shape
    assert d == FEAT, "LearnableScalar MLP is hard-wired to 64 features"
    out_dtype = embs.dtype

    # ---- odd N (rare): pad a single row so the (N,64)->(N/2,128) reshape is
    # valid; even N takes the zero-copy path (no pad, no final slice). ----
    pad = n % 2
    if pad:
        embs = jnp.pad(embs, ((0, 1), (0, 0)))
        w = jnp.pad(w, ((0, 1), (0, 0)))
    n_eff = n + pad
    m = n_eff // 2                                     # packed rows

    # ---- lane-dense packing (free row-major reshapes) ----
    x2 = embs.reshape(m, LANES)                        # (N/2, 128)
    w2d = w.reshape(m, 2)                              # (N/2, 2): [w_even, w_odd]

    # ---- tile selection ----
    # Cap at ~m/2 (rounded to 8) so the grid has >= 2 programs whenever m > 8
    # (lets "parallel" shard across v7x's two TensorCores), and at 8192 so the
    # double-buffered VMEM budget (x + out + lane-padded w = 6 * bm * 512 B)
    # stays well under the 32 MiB scoped limit.  No padding of m to a multiple
    # of bm: the grid is cdiv(m, bm) and Pallas masks the ragged last block.
    half = _round_up(pl.cdiv(m, 2), 8)
    bm = max(8, min(_round_up(block_rows, 8), half, 8192))
    grid = (pl.cdiv(m, bm),)

    x_spec = pl.BlockSpec((bm, LANES), lambda i: (i, 0))
    w_spec = pl.BlockSpec((bm, 2), lambda i: (i, 0))
    out_spec = pl.BlockSpec((bm, LANES), lambda i: (i, 0))
    out_shape = jax.ShapeDtypeStruct((m, LANES), out_dtype)

    compiler_params = pltpu.CompilerParams(
        dimension_semantics=("parallel",),             # megacore-shardable
        vmem_limit_bytes=32 * 1024 * 1024,             # safe on v5e/v6e/v7x
    )

    elem_bytes = jnp.dtype(out_dtype).itemsize
    io_bytes = 2 * m * LANES * elem_bytes + m * 2 * 4  # x read + out write + w read

    if use_mlp:
        # Block-diagonal stacked MLP weights so one matmul handles both halves.
        w1 = w1.astype(jnp.float32)
        b1 = b1.astype(jnp.float32)
        w2 = w2.astype(jnp.float32)
        w1s = jnp.zeros((LANES, 2 * MID), jnp.float32)
        w1s = w1s.at[:FEAT, :MID].set(w1).at[FEAT:, MID:].set(w1)   # (128, 64)
        b1s = jnp.concatenate([b1, b1], axis=1)                      # (1, 64)
        w2s = jnp.zeros((2 * MID, 2), jnp.float32)
        w2s = w2s.at[:MID, :1].set(w2).at[MID:, 1:].set(w2)          # (64, 2)

        cost = pl.CostEstimate(
            flops=int(m * (2 * LANES * 2 * MID + 2 * 2 * MID * 2 + 3 * LANES)),
            transcendentals=int(m * (2 * MID + 4)),
            bytes_accessed=int(io_bytes + (LANES * 2 * MID + 2 * MID + 2 * MID * 2) * 4),
        )
        out = pl.pallas_call(
            _ls_mlp_kernel,
            out_shape=out_shape,
            grid=grid,
            in_specs=[
                x_spec,                                              # packed embs tile
                w_spec,                                              # packed w tile
                pl.BlockSpec((LANES, 2 * MID), lambda i: (0, 0)),    # W1 stacked (full)
                pl.BlockSpec((1, 2 * MID), lambda i: (0, 0)),        # b1 stacked (full)
                pl.BlockSpec((2 * MID, 2), lambda i: (0, 0)),        # W2 stacked (full)
            ],
            out_specs=out_spec,
            compiler_params=compiler_params,
            cost_estimate=cost,
        )(x2, w2d, w1s, b1s, w2s)
    else:
        cost = pl.CostEstimate(
            flops=int(m * (2 * LANES + 2)),
            transcendentals=int(m * 2),
            bytes_accessed=int(io_bytes),
        )
        out = pl.pallas_call(
            _ls_plain_kernel,
            out_shape=out_shape,
            grid=grid,
            in_specs=[x_spec, w_spec],
            out_specs=out_spec,
            compiler_params=compiler_params,
            cost_estimate=cost,
        )(x2, w2d)

    # unpack the lane-dense layout (free reshape); slice only if N was odd
    out = out.reshape(n_eff, FEAT)
    return out if pad == 0 else out[:n]


# ---------------------------------------------------------------------------
# Pure-JAX reference (sanity check)
# ---------------------------------------------------------------------------
def reference_forward(embs, w, w1=None, b1=None, w2=None, use_mlp=True):
    scale = jax.nn.sigmoid(w)
    if use_mlp:
        h = jnp.tanh(embs @ w1 + b1)
        s = jax.nn.sigmoid(h @ w2)
        scale = scale + s
    return embs * scale


if __name__ == "__main__":
    key = jax.random.PRNGKey(0)
    k_embs, k_w, k_w1, k_b1, k_w2 = jax.random.split(key, 5)

    # Small, deliberately non-aligned num_nodes to exercise the ragged grid.
    num_nodes = 300

    embs = jax.random.normal(k_embs, (num_nodes, FEAT), dtype=jnp.float32)
    # Torch init is zeros; use nonzero values here for a stronger check.
    w = 0.1 * jax.random.normal(k_w, (num_nodes, 1), dtype=jnp.float32)
    w1 = jax.random.normal(k_w1, (FEAT, MID), dtype=jnp.float32) * (1.0 / FEAT**0.5)
    b1 = jax.random.normal(k_b1, (1, MID), dtype=jnp.float32) * 0.01
    w2 = jax.random.normal(k_w2, (MID, 1), dtype=jnp.float32) * (1.0 / MID**0.5)

    # MLP-scaling branch ('learnable_scalar_plus_mlp_scaling' in config['str_set'])
    out_mlp = learnable_scalar_forward(embs, w, w1, b1, w2, use_mlp=True)
    out_mlp = jax.block_until_ready(out_mlp)
    ref_mlp = reference_forward(embs, w, w1, b1, w2, use_mlp=True)
    assert out_mlp.shape == ref_mlp.shape
    assert jnp.allclose(out_mlp, ref_mlp, atol=1e-5, rtol=1e-5)

    # Plain branch (mlp is None)
    out_plain = learnable_scalar_forward(embs, w, use_mlp=False)
    out_plain = jax.block_until_ready(out_plain)
    ref_plain = reference_forward(embs, w, use_mlp=False)
    assert jnp.allclose(out_plain, ref_plain, atol=1e-5, rtol=1e-5)

    # Odd-N edge case (exercises the 1-row pad + final slice path)
    n_odd = 301
    embs_o = jax.random.normal(k_embs, (n_odd, FEAT), dtype=jnp.float32)
    w_o = 0.1 * jax.random.normal(k_w, (n_odd, 1), dtype=jnp.float32)
    out_o = jax.block_until_ready(
        learnable_scalar_forward(embs_o, w_o, w1, b1, w2, use_mlp=True))
    ref_o = reference_forward(embs_o, w_o, w1, b1, w2, use_mlp=True)
    assert out_o.shape == ref_o.shape
    assert jnp.allclose(out_o, ref_o, atol=1e-5, rtol=1e-5)

    # TODO(synk): the `idx is not None` gather path (w[idx]) is parameter glue;
    # do it in plain JAX (w[idx]) before calling the kernel.

    print("KERNEL_OK")
</pallas_src>

<mosaic_0001>
module attributes {stable_mosaic.version = 11 : i64} {
  func.func @_ls_mlp_kernel(%arg0: i32, %arg1: memref<80x128xf32, #tpu.memory_space<vmem>>, %arg2: memref<80x2xf32, #tpu.memory_space<vmem>>, %arg3: memref<128x64xf32, #tpu.memory_space<vmem>>, %arg4: memref<1x64xf32, #tpu.memory_space<vmem>>, %arg5: memref<64x2xf32, #tpu.memory_space<vmem>>, %arg6: memref<80x128xf32, #tpu.memory_space<vmem>>) attributes {dimension_semantics = [#tpu.dimension_semantics<parallel>], iteration_bounds = array<i64: 2>, scalar_prefetch = 0 : i64, scratch_operands = 0 : i64, tpu.core_type = #tpu.core_type<tc>, window_params = [{transform_indices = @transform_0, window_bounds = array<i64: 80, 128>}, {transform_indices = @transform_1, window_bounds = array<i64: 80, 2>}, {pipeline_mode = #tpu.pipeline_mode<synchronous>, transform_indices = @transform_2, window_bounds = array<i64: 128, 64>}, {pipeline_mode = #tpu.pipeline_mode<synchronous>, transform_indices = @transform_3, window_bounds = array<i64: 1, 64>}, {pipeline_mode = #tpu.pipeline_mode<synchronous>, transform_indices = @transform_4, window_bounds = array<i64: 64, 2>}, {transform_indices = @transform_5, window_bounds = array<i64: 80, 128>}]} {
    %c0 = arith.constant 0 : index
    %c0_0 = arith.constant 0 : index
    %0 = vector.load %arg1[%c0, %c0_0] : memref<80x128xf32, #tpu.memory_space<vmem>>, vector<80x128xf32>
    %c0_1 = arith.constant 0 : index
    %c0_2 = arith.constant 0 : index
    %1 = vector.load %arg3[%c0_1, %c0_2] : memref<128x64xf32, #tpu.memory_space<vmem>>, vector<128x64xf32>
    %cst = arith.constant dense<0.000000e+00> : vector<80x64xf32>
    %2 = tpu.matmul %0, %1, %cst {dimension_numbers = #tpu.dot_dimension_numbers<[1], [0], [0], [1], [0, 0, 1, 1], [], []>} : vector<80x128xf32>, vector<128x64xf32>, vector<80x64xf32> -> vector<80x64xf32>
    %c0_3 = arith.constant 0 : index
    %c0_4 = arith.constant 0 : index
    %3 = vector.load %arg4[%c0_3, %c0_4] : memref<1x64xf32, #tpu.memory_space<vmem>>, vector<1x64xf32>
    %4 = vector.broadcast %3 : vector<1x64xf32> to vector<80x64xf32>
    %5 = arith.addf %2, %4 : vector<80x64xf32>
    %6 = math.tanh %5 : vector<80x64xf32>
    %c0_5 = arith.constant 0 : index
    %c0_6 = arith.constant 0 : index
    %7 = vector.load %arg5[%c0_5, %c0_6] : memref<64x2xf32, #tpu.memory_space<vmem>>, vector<64x2xf32>
    %cst_7 = arith.constant dense<0.000000e+00> : vector<80x2xf32>
    %8 = tpu.matmul %6, %7, %cst_7 {dimension_numbers = #tpu.dot_dimension_numbers<[1], [0], [0], [1], [0, 0, 1, 1], [], []>} : vector<80x64xf32>, vector<64x2xf32>, vector<80x2xf32> -> vector<80x2xf32>
    %9 = arith.negf %8 : vector<80x2xf32>
    %10 = math.exp %9 : vector<80x2xf32>
    %cst_8 = arith.constant 1.000000e+00 : f32
    %11 = vector.broadcast %cst_8 : f32 to vector<80x2xf32>
    %12 = arith.addf %11, %10 : vector<80x2xf32>
    %13 = arith.divf %11, %12 : vector<80x2xf32>
    %c0_9 = arith.constant 0 : index
    %c0_10 = arith.constant 0 : index
    %14 = vector.load %arg2[%c0_9, %c0_10] : memref<80x2xf32, #tpu.memory_space<vmem>>, vector<80x2xf32>
    %15 = arith.negf %14 : vector<80x2xf32>
    %16 = math.exp %15 : vector<80x2xf32>
    %cst_11 = arith.constant 1.000000e+00 : f32
    %17 = vector.broadcast %cst_11 : f32 to vector<80x2xf32>
    %18 = arith.addf %17, %16 : vector<80x2xf32>
    %19 = arith.divf %17, %18 : vector<80x2xf32>
    %20 = arith.addf %19, %13 : vector<80x2xf32>
    %21 = tpu.iota {dimensions = array<i32: 1>} : vector<80x128xi32>
    %c64_i32 = arith.constant 64 : i32
    %22 = vector.broadcast %c64_i32 : i32 to vector<80x128xi32>
    %23 = arith.cmpi slt, %21, %22 : vector<80x128xi32>
    %24 = vector.extract_strided_slice %20 {offsets = [0, 0], sizes = [80, 1], strides = [1, 1]} : vector<80x2xf32> to vector<80x1xf32>
    %25 = vector.extract_strided_slice %20 {offsets = [0, 1], sizes = [80, 1], strides = [1, 1]} : vector<80x2xf32> to vector<80x1xf32>
    %26 = vector.shape_cast %24 : vector<80x1xf32> to vector<80x1xf32>
    %27 = vector.broadcast %26 : vector<80x1xf32> to vector<80x128xf32>
    %28 = vector.shape_cast %25 : vector<80x1xf32> to vector<80x1xf32>
    %29 = vector.broadcast %28 : vector<80x1xf32> to vector<80x128xf32>
    %30 = arith.select %23, %27, %29 : vector<80x128xi1>, vector<80x128xf32>
    %31 = arith.mulf %0, %30 : vector<80x128xf32>
    %c0_12 = arith.constant 0 : index
    %c0_13 = arith.constant 0 : index
    %32 = vector.load %arg6[%c0_12, %c0_13] : memref<80x128xf32, #tpu.memory_space<vmem>>, vector<80x128xf32>
    tpu.vector_store %arg6[%c0_12, %c0_13], %31 {strides = array<i32>} : memref<80x128xf32, #tpu.memory_space<vmem>>, vector<80x128xf32>,
    return
  }
  func.func @transform_0(%arg0: i32) -> (i32, i32) {
    %c0_i32 = arith.constant 0 : i32
    %c0_i32_0 = arith.constant 0 : i32
    return %arg0, %c0_i32 : i32, i32
  }
  func.func @transform_1(%arg0: i32) -> (i32, i32) {
    %c0_i32 = arith.constant 0 : i32
    %c0_i32_0 = arith.constant 0 : i32
    return %arg0, %c0_i32 : i32, i32
  }
  func.func @transform_2(%arg0: i32) -> (i32, i32) {
    %c0_i32 = arith.constant 0 : i32
    %c0_i32_0 = arith.constant 0 : i32
    %c0_i32_1 = arith.constant 0 : i32
    return %c0_i32, %c0_i32_0 : i32, i32
  }
  func.func @transform_3(%arg0: i32) -> (i32, i32) {
    %c0_i32 = arith.constant 0 : i32
    %c0_i32_0 = arith.constant 0 : i32
    %c0_i32_1 = arith.constant 0 : i32
    return %c0_i32, %c0_i32_0 : i32, i32
  }
  func.func @transform_4(%arg0: i32) -> (i32, i32) {
    %c0_i32 = arith.constant 0 : i32
    %c0_i32_0 = arith.constant 0 : i32
    %c0_i32_1 = arith.constant 0 : i32
    return %c0_i32, %c0_i32_0 : i32, i32
  }
  func.func @transform_5(%arg0: i32) -> (i32, i32) {
    %c0_i32 = arith.constant 0 : i32
    %c0_i32_0 = arith.constant 0 : i32
    return %arg0, %c0_i32 : i32, i32
  }
}

</mosaic_0001>

<bundles_post_ra>
// kernel: learnable_scalar_forward.1
= control target key start
LH: loop header
LB: loop body
LE: loop exit
PB: predicated region body
PF: predicated region fallthrough
CT: control target
= control target key end

     0   :  { %s1679_s18 = smov 0   ;;  %s1681_s19 = smov 0   ;;  %s1978_s0 = inlined_call_operand.vmem [shape: f32[150,128], index: 0, kind: input, shape index: {}]   ;;  %s1979_s1 = inlined_call_operand.vmem [shape: f32[150,2], index: 1, kind: input, shape index: {}]   ;;  %s1980_s2 = inlined_call_operand.vmem [shape: f32[128,64], index: 2, kind: input, shape index: {}]   ;;  %s1981_s3 = inlined_call_operand.vmem [shape: f32[1,64], index: 3, kind: input, shape index: {}]   ;;  %s1982_s4 = inlined_call_operand.vmem [shape: f32[64,2], index: 4, kind: input, shape index: {}]   ;;  %s1983_s5 = inlined_call_operand.vmem [shape: f32[150,128], index: 5, kind: output, shape index: {}]  }
   0x1   :  { %s1683_s20 = smov 0  }
   0x2 LB: > { %s1692_s21 = sadd.s32 4294967295, %s1613_s20   ;;  %s1694_s22 = sadd.s32 1, %s1613_s20   ;;  %s1613_s20 = sphi %s1683_s20, %s1990_s20   ;;  %s1609_s19 = sphi %s1681_s19, %s1989_s19   ;;  %s1605_s18 = sphi %s1679_s18, %s1988_s18  }
   0x3   : > { %s134_s23 = ssub.s32 %s1613_s20, %s1694_s22  ;;  %s137_s24 = sadd.s32 1, %s1609_s19 }
   0x4   : > { %p135_p0 = scmp.eq.s32.totalorder %s134_s23, 0  ;;  %p147_p1 = scmp.ne.s32.totalorder %s1609_s19, %s1605_s18 }
   0x5   : > { %p148_p2 = scmp.eq.s32.totalorder %s1692_s21, 1  ;;  %p1131_p3 = scmp.ge.s32.totalorder %s1613_s20, 1 }
   0x6   : > { %s1702_s25 = scalar_select %p135_p0, %s1609_s19, %s137_s24  }
   0x7   : > { %p1704_p4 = por %p148_p2, %p147_p1  ;;  %p215_p5 = scmp.lt.s32.totalorder %s1613_s20, 3 }
   0x9   : > { %p216_p6 = pnand %p1131_p3, %p215_p5 }
   0xa   : > { %v298_v0 = vld [vmem:[%s1980_s2] sm:$0xff] (!%p216_p6)  ;;  %v299_v1 = vld [vmem:[%s1980_s2 + $0x8] sm:$0xff] (!%p216_p6)  ;;  %v300_v2 = vld [vmem:[%s1980_s2 + $0x10] sm:$0xff] (!%p216_p6)  ;;  %s1718_s8 = smul.u32 (!%p216_p6), 10, %s1692_s21  ;;  %vm454_vm0 = vcmask (!%p216_p6), 523264  }
   0xb   : > { %219 = sbr.rel (%p216_p6) target bundleno = 749 (0x2ed), region = 40  ;;  %v1300_v3 = vpack.c.bf16 (!%p216_p6), %v299_v1, %v298_v0  ;;  %v301_v4 = vld [vmem:[%s1980_s2 + $0x18] sm:$0xff] (!%p216_p6)  ;;  %v302_v6 = vld [vmem:[%s1980_s2 + $0x20] sm:$0xff] (!%p216_p6)  ;;  %v303_v7 = vld [vmem:[%s1980_s2 + $0x28] sm:$0xff] (!%p216_p6) }
   0xc   : > { %v1304_v5 = vpack.c.bf16 (!%p216_p6), %v301_v4, %v300_v2  ;;  %p260_p7 = scmp.lt.s32.totalorder (!%p216_p6), %s1718_s8, 18  ;;  %v1308_v8 = vpack.c.bf16 (!%p216_p6), %v303_v7, %v302_v6  ;;  %v304_v9 = vld [vmem:[%s1980_s2 + $0x30] sm:$0xff] (!%p216_p6)  ;;  %v305_v10 = vld [vmem:[%s1980_s2 + $0x38] sm:$0xff] (!%p216_p6)  ;;  %v306_v13 = vld [vmem:[%s1980_s2 + $0x40] sm:$0xff] (!%p216_p6) }
   0xd   : > { %1301 = vmatprep.subr.bf16.mxu0 (!%p216_p6), %v1300_v3  ;;  %v1312_v12 = vpack.c.bf16 (!%p216_p6), %v305_v10, %v304_v9  ;;  %v307_v14 = vld [vmem:[%s1980_s2 + $0x48] sm:$0xff] (!%p216_p6)  ;;  %v308_v16 = vld [vmem:[%s1980_s2 + $0x50] sm:$0xff] (!%p216_p6)  ;;  %v309_v17 = vld [vmem:[%s1980_s2 + $0x58] sm:$0xff] (!%p216_p6) }
   0xe   : > { %1303 = vmatpush3.bf16.msra.mxu0 (!%p216_p6), %v1300_v3  ;;  %v1316_v15 = vpack.c.bf16 (!%p216_p6), %v307_v14, %v306_v13  ;;  %v1320_v18 = vpack.c.bf16 (!%p216_p6), %v309_v17, %v308_v16  ;;  %v310_v19 = vld [vmem:[%s1980_s2 + $0x60] sm:$0xff] (!%p216_p6)  ;;  %v311_v20 = vld [vmem:[%s1980_s2 + $0x68] sm:$0xff] (!%p216_p6)  ;;  %v312_v22 = vld [vmem:[%s1980_s2 + $0x70] sm:$0xff] (!%p216_p6)  ;;  %v1647_v14 = vmov (!%p216_p6), 1  }
   0xf   : > { %1305 = vmatprep.subr.bf16.mxu0 (!%p216_p6), %v1304_v5  ;;  %v1324_v21 = vpack.c.bf16 (!%p216_p6), %v311_v20, %v310_v19  ;;  %v313_v23 = vld [vmem:[%s1980_s2 + $0x78] sm:$0xff] (!%p216_p6)  ;;  %v446_v34 = vld [vmem:[%s1982_s4] sm:$0xff] (!%p216_p6)  ;;  %v447_v35 = vld [vmem:[%s1982_s4 + $0x8] sm:$0xff] (!%p216_p6)  ;;  %1441 = vset.pattern.permute.xlu1 (!%p216_p6), %v1647_v14 }
  0x10   : > { %v1328_v24 = vpack.c.bf16 (!%p216_p6), %v313_v23, %v312_v22  ;;  %v1332_v36 = vpack.c.bf16 (!%p216_p6), %v447_v35, %v446_v34  ;;  %v448_v37 = vld [vmem:[%s1982_s4 + $0x10] sm:$0xff] (!%p216_p6)  ;;  %v449_v38 = vld [vmem:[%s1982_s4 + $0x18] sm:$0xff] (!%p216_p6)  ;;  %v450_v40 = vld [vmem:[%s1982_s4 + $0x20] sm:$0xff] (!%p216_p6) }
  0x11   : > { %v1336_v39 = vpack.c.bf16 (!%p216_p6), %v449_v38, %v448_v37  ;;  %v451_v41 = vld [vmem:[%s1982_s4 + $0x28] sm:$0xff] (!%p216_p6)  ;;  %v452_v43 = vld [vmem:[%s1982_s4 + $0x30] sm:$0xff] (!%p216_p6)  ;;  %v453_v44 = vld [vmem:[%s1982_s4 + $0x38] sm:$0xff] (!%p216_p6) }
  0x12   : > { %s1731_s15 = scalar_select %p260_p7, %s1718_s8, 18  ;;  %1307 = vmatpush3.bf16.msra.mxu0 %v1304_v5  ;;  %1333 = vmatprep.subr.bf16.mxu1 %v1332_v36  ;;  %v1340_v42 = vpack.c.bf16 %v451_v41, %v450_v40  ;;  %v1344_v45 = vpack.c.bf16 %v453_v44, %v452_v43  ;;  %v1134_v46 = vld [vmem:[%s1981_s3] ss:$0 sm:$0xff] }
  0x13   : > { %1309 = vmatprep.subr.bf16.mxu0 %v1308_v8  ;;  %1335 = vmatpush3.bf16.msra.mxu1 %v1332_v36  ;;  %s1177_s13 = smul.u32 (%p1704_p4), 80, %s1692_s21 }
  0x14   : > { %s1132_s24 = sshll.u32 %s1731_s15, 3  ;;  %1337 = vmatprep.subr.bf16.mxu1 %v1336_v39  ;;  %s252_s15 = sand.u32 1, %s1605_s18  }
  0x15   : > { %s1745_s29 = scalar_lea.vmem %s1978_s0, %s1132_s24  ;;  %s1855_s11 = scalar_lea.vmem %s1979_s1, %s1132_s24 }
  0x16   : > { %v1748_v11 = vld [vmem:[%s1745_s29] sm:$0xff]  ;;  %1311 = vmatpush3.bf16.msra.mxu0 %v1308_v8  ;;  %v1776_v25 = vld [vmem:[%s1745_s29 + $0x8] sm:$0xff]  ;;  %v1779_v26 = vld [vmem:[%s1745_s29 + $0x10] sm:$0xff]  ;;  %s1348_s24 = smul.u32 80, %s252_s15  ;;  %s871_s18 = ssub.s32 (%p1704_p4), 19, %s1718_s8 }
  0x17   : > { %1254 = vmatprep.mubr.f32.mxu0 %v1748_v11  ;;  %1313 = vmatprep.subr.bf16.mxu0 %v1312_v12  ;;  %v1784_v27 = vld [vmem:[%s1745_s29 + $0x18] sm:$0xff]  ;;  %v1787_v28 = vld [vmem:[%s1745_s29 + $0x20] sm:$0xff]  ;;  %v1792_v29 = vld [vmem:[%s1745_s29 + $0x28] sm:$0xff]  ;;  %p872_p8 = scmp.lt.s32.totalorder (%p1704_p4), %s871_s18, 10  ;;  %s1926_s16 = scalar_lea.vmem (%p1704_p4), %s1983_s5, %s1177_s13  }
  0x18   : > { %v1795_v30 = vld [vmem:[%s1745_s29 + $0x30] sm:$0xff]  ;;  %v1800_v31 = vld [vmem:[%s1745_s29 + $0x38] sm:$0xff]  ;;  %v1803_v32 = vld [vmem:[%s1745_s29 + $0x40] sm:$0xff]  ;;  %1339 = vmatpush3.bf16.msra.mxu1 %v1336_v39  ;;  %s1889_s12 = scalar_lea.vmem [#allocation2], %s1348_s24  }
  0x19   : > { %v1808_v33 = vld [vmem:[%s1745_s29 + $0x48] sm:$0xff]  ;;  %1341 = vmatprep.subr.bf16.mxu1 %v1340_v42  ;;  %v660_v17 = vld [vmem:[%s1855_s11] sm:$0xff]  ;;  %v662_v20 = vld [vmem:[%s1855_s11 + $0x10] sm:$0xff] }
  0x1a   : > { %1315 = vmatpush3.bf16.msra.mxu0 %v1312_v12  ;;  %v661_v16 = vld [vmem:[%s1855_s11 + $0x8] sm:$0xff]  ;;  %v1157_v23 = vmul.f32 -1.442695, %v662_v20  ;;  %v664_v43 = vld [vmem:[%s1855_s11 + $0x20] sm:$0xff]  ;;  %v667_v44 = vld [vmem:[%s1855_s11 + $0x38] sm:$0xff] }
  0x1b   : > { %1317 = vmatprep.subr.bf16.mxu0 %v1316_v15  ;;  %v1156_v19 = vmul.f32 -1.442695, %v661_v16 }
  0x1c   : > { %1343 = vmatpush3.bf16.msra.mxu1 %v1340_v42 }
  0x1d   : > { %1345 = vmatprep.subr.bf16.mxu1 %v1344_v45 }
  0x1e   : > { %1319 = vmatpush3.bf16.msra.mxu0 %v1316_v15  ;;  %v1648_v15 = vmov 0  }
  0x1f   : > { %1321 = vmatprep.subr.bf16.mxu0 %v1320_v18  ;;  %1440 = vset.pattern.permute.xlu0 %v1648_v15 }
  0x20   : > { %1347 = vmatpush3.bf16.msra.mxu1 %v1344_v45 }
  0x22   : > { %1323 = vmatpush3.bf16.msra.mxu0 %v1320_v18  ;;  %v663_v18 = vld [vmem:[%s1855_s11 + $0x18] sm:$0xff] }
  0x23   : > { %1325 = vmatprep.subr.bf16.mxu0 %v1324_v21  ;;  %v1158_v22 = vmul.f32 -1.442695, %v663_v18 }
  0x26   : > { %1327 = vmatpush3.bf16.msra.mxu0 %v1324_v21  ;;  %v1155_v21 = vmul.f32 -1.442695, %v660_v17 }
  0x27   : > { %1329 = vmatprep.subr.bf16.mxu0 %v1328_v24 }
  0x2a   : > { %1331 = vmatpush3.bf16.msra.mxu0 %v1328_v24  ;;  %v665_v24 = vld [vmem:[%s1855_s11 + $0x28] sm:$0xff] }
  0x2b   : > { %v1160_v34 = vmul.f32 -1.442695, %v665_v24 }
  0x2d   : > { %1255 = vmatmul.mubr.f32.vlgmr.msra.gmra.mrb[0].mxu0 %v1776_v25 }
  0x2e   : > { %1257 = vmatprep.mubr.f32.mxu0 %v1779_v26 }
  0x31   : > { %1258 = vmatmul.mubr.f32.gmra.mrb[2].mxu0 %v1784_v27 }
  0x32   : > { %1260 = vmatprep.mubr.f32.mxu0 %v1787_v28 }
  0x35   : > { %1261 = vmatmul.mubr.f32.gmra.mrb[4].mxu0 %v1792_v29 }
  0x36   : > { %1263 = vmatprep.mubr.f32.mxu0 %v1795_v30 }
  0x39   : > { %1264 = vmatmul.mubr.f32.gmra.mrb[6].mxu0 %v1800_v31 }
  0x3a   : > { %1266 = vmatprep.mubr.f32.mxu0 %v1803_v32 }
  0x3d   : > { %1267 = vmatmul.mubr.f32.gmra.mrb[8].mxu0 %v1808_v33 }
 0x100   : > { %v1256_v47 = vpop.f32.mrb[0].mxu0 }
 0x101   : > { %v393_v48 = vadd.f32 %v1256_v47, %v1134_v46  ;;  %v387_v49 = vpop.f32.mrb[1].mxu0 }
 0x102   : > { %v388_v50 = vadd.f32 %v1134_v46, %v387_v49 }
 0x104   : > { %1455 = vtanh.f32 %v388_v50  ;;  %v1259_v51 = vpop.f32.mrb[2].mxu0  ;;  %v1162_v50 = vmul.f32 -1.442695, %v667_v44 }
 0x105   : > { %1457 = vtanh.f32 %v393_v48  ;;  %v403_v52 = vadd.f32 %v1259_v51, %v1134_v46  ;;  %v397_v53 = vpop.f32.mrb[3].mxu0  ;;  %v1159_v48 = vmul.f32 -1.442695, %v664_v43  ;;  %v666_v51 = vld [vmem:[%s1855_s11 + $0x30] sm:$0xff] }
 0x106   : > { %v398_v54 = vadd.f32 %v1134_v46, %v397_v53 }
 0x107   : > { %1459 = vtanh.f32 %v403_v52 }
 0x108   : > { %1461 = vtanh.f32 %v398_v54  ;;  %v1262_v55 = vpop.f32.mrb[4].mxu0 }
 0x109   : > { %v413_v56 = vadd.f32 %v1262_v55, %v1134_v46  ;;  %v407_v57 = vpop.f32.mrb[5].mxu0 }
 0x10a   : > { %v408_v58 = vadd.f32 %v1134_v46, %v407_v57 }
 0x10b   : > { %1463 = vtanh.f32 %v413_v56  ;;  %v1161_v56 = vmul.f32 -1.442695, %v666_v51 }
 0x10c   : > { %1465 = vtanh.f32 %v408_v58  ;;  %v1265_v59 = vpop.f32.mrb[6].mxu0 }
 0x10d   : > { %v423_v60 = vadd.f32 %v1265_v59, %v1134_v46  ;;  %v417_v61 = vpop.f32.mrb[7].mxu0  ;;  %v669_v59 = vld [vmem:[%s1855_s11 + $0x48] sm:$0xff] }
 0x10e   : > { %v1456_v62 = vpop.eup %1455  ;;  %v418_v63 = vadd.f32 %v1134_v46, %v417_v61 }
 0x10f   : > { %v1458_v0 = vpop.eup %1457  ;;  %1285 = vmatprep.mubr.msk.f32.mxu1 %vm454_vm0, %v1456_v62  ;;  %1467 = vtanh.f32 %v423_v60  ;;  %v668_v60 = vld [vmem:[%s1855_s11 + $0x40] sm:$0xff] }
 0x110   : > { %1286 = vmatmul.mubr.msk.f32.vlgmr.msra.gmra.mrb[0].mxu1 %vm454_vm0, %v1458_v0  ;;  %1469 = vtanh.f32 %v418_v63  ;;  %v1268_v1 = vpop.f32.mrb[8].mxu0 }
 0x111   : > { %v1460_v2 = vpop.eup %1459  ;;  %v433_v3 = vadd.f32 %v1268_v1, %v1134_v46  ;;  %v427_v4 = vpop.f32.mrb[9].mxu0  ;;  %v1164_v1 = vmul.f32 -1.442695, %v669_v59 }
 0x112   : > { %v1462_v5 = vpop.eup %1461  ;;  %v428_v6 = vadd.f32 %v1134_v46, %v427_v4  ;;  %v1163_v4 = vmul.f32 -1.442695, %v668_v60 }
 0x113   : > { %1288 = vmatprep.mubr.msk.f32.mxu1 %vm454_vm0, %v1462_v5  ;;  %1471 = vtanh.f32 %v433_v3 }
 0x114   : > { %1289 = vmatmul.mubr.msk.f32.gmra.mrb[2].mxu1 %vm454_vm0, %v1460_v2  ;;  %1473 = vtanh.f32 %v428_v6 }
 0x115   : > { %v1464_v7 = vpop.eup %1463  ;;  %1475 = vpow2.f32 %v1156_v19 }
 0x116   : > { %v1466_v8 = vpop.eup %1465  ;;  %1477 = vpow2.f32 %v1155_v21 }
 0x117   : > { %1291 = vmatprep.mubr.msk.f32.mxu1 %vm454_vm0, %v1466_v8  ;;  %1479 = vpow2.f32 %v1158_v22 }
 0x118   : > { %1292 = vmatmul.mubr.msk.f32.gmra.mrb[4].mxu1 %vm454_vm0, %v1464_v7  ;;  %1481 = vpow2.f32 %v1157_v23 }
 0x119   : > { %v1468_v9 = vpop.eup %1467  ;;  %1483 = vpow2.f32 %v1160_v34 }
 0x11a   : > { %v1470_v10 = vpop.eup %1469 }
 0x11b   : > { %1294 = vmatprep.mubr.msk.f32.mxu1 %vm454_vm0, %v1470_v10 }
 0x11c   : > { %1295 = vmatmul.mubr.msk.f32.gmra.mrb[6].mxu1 %vm454_vm0, %v1468_v9 }
 0x11d   : > { %v1472_v12 = vpop.eup %1471 }
 0x11e   : > { %v1474_v13 = vpop.eup %1473 }
 0x11f   : > { %1297 = vmatprep.mubr.msk.f32.mxu1 %vm454_vm0, %v1474_v13  ;;  %v1476_v35 = vpop.eup %1475 }
 0x120   : > { %1298 = vmatmul.mubr.msk.f32.gmra.mrb[8].mxu1 %vm454_vm0, %v1472_v12  ;;  %v1478_v36 = vpop.eup %1477  ;;  %v701_v39 = vadd.f32 1.0, %v1476_v35 }
 0x121   : > { %v1480_v37 = vpop.eup %1479  ;;  %v700_v40 = vadd.f32 1.0, %v1478_v36 }
 0x122   : > { %v1482_v38 = vpop.eup %1481  ;;  %v703_v41 = vadd.f32 1.0, %v1480_v37  ;;  %1485 = vrcp.f32 %v701_v39 }
 0x123   : > { %v702_v42 = vadd.f32 1.0, %v1482_v38  ;;  %1487 = vrcp.f32 %v700_v40  ;;  %v1484_v52 = vpop.eup %1483 }
 0x124   : > { %1489 = vrcp.f32 %v703_v41  ;;  %v705_v58 = vadd.f32 1.0, %v1484_v52 }
 0x125   : > { %1491 = vrcp.f32 %v702_v42 }
 0x12c   : > { %v1486_v62 = vpop.eup %1485 }
 0x12d   : > { %v1488_v2 = vpop.eup %1487 }
 0x12e   : > { %v1867_v5 = vpop.eup %1489 }
 0x12f   : > { %v1869_v6 = vpop.eup %1491 }
 0x1e3   : > { %v1287_v45 = vpop.f32.mrb[0].mxu1 }
 0x1e4   : > { %v1146_v46 = vmul.f32 -1.442695, %v1287_v45  ;;  %v551_v47 = vpop.f32.mrb[1].mxu1 }
 0x1e5   : > { %v1145_v49 = vmul.f32 -1.442695, %v551_v47 }
 0x1e6   : > { %1493 = vpow2.f32 %v1146_v46 }
 0x1e7   : > { %1495 = vpow2.f32 %v1145_v49  ;;  %v1290_v53 = vpop.f32.mrb[2].mxu1 }
 0x1e8   : > { %v1148_v54 = vmul.f32 -1.442695, %v1290_v53  ;;  %v561_v55 = vpop.f32.mrb[3].mxu1  ;;  %1497 = vpow2.f32 %v1159_v48 }
 0x1e9   : > { %v1147_v57 = vmul.f32 -1.442695, %v561_v55  ;;  %1499 = vpow2.f32 %v1162_v50 }
 0x1ea   : > { %1501 = vpow2.f32 %v1148_v54 }
 0x1eb   : > { %1503 = vpow2.f32 %v1147_v57  ;;  %v1293_v61 = vpop.f32.mrb[4].mxu1 }
 0x1ec   : > { %v1150_v63 = vmul.f32 -1.442695, %v1293_v61  ;;  %v571_v0 = vpop.f32.mrb[5].mxu1  ;;  %1505 = vpow2.f32 %v1161_v56 }
 0x1ed   : > { %v1149_v3 = vmul.f32 -1.442695, %v571_v0  ;;  %1507 = vrcp.f32 %v705_v58 }
 0x1ee   : > { %1509 = vpow2.f32 %v1150_v63 }
 0x1ef   : > { %1511 = vpow2.f32 %v1149_v3  ;;  %v1296_v7 = vpop.f32.mrb[6].mxu1 }
 0x1f0   : > { %v1494_v8 = vpop.eup %1493  ;;  %v1152_v9 = vmul.f32 -1.442695, %v1296_v7  ;;  %v581_v10 = vpop.f32.mrb[7].mxu1  ;;  %1513 = vpow2.f32 %v1164_v1 }
 0x1f1   : > { %v1496_v12 = vpop.eup %1495  ;;  %v631_v13 = vadd.f32 1.0, %v1494_v8  ;;  %v1151_v16 = vmul.f32 -1.442695, %v581_v10  ;;  %1515 = vpow2.f32 %v1163_v4 }
 0x1f2   : > { %v1498_v17 = vpop.eup %1497  ;;  %v630_v18 = vadd.f32 1.0, %v1496_v12  ;;  %1517 = vpow2.f32 %v1152_v9 }
 0x1f3   : > { %v1500_v19 = vpop.eup %1499  ;;  %1519 = vrcp.f32 %v631_v13  ;;  %v1299_v20 = vpop.f32.mrb[8].mxu1  ;;  %v704_v38 = vadd.f32 1.0, %v1498_v17 }
 0x1f4   : > { %v1502_v21 = vpop.eup %1501  ;;  %1521 = vrcp.f32 %v630_v18  ;;  %v1154_v22 = vmul.f32 -1.442695, %v1299_v20  ;;  %v591_v23 = vpop.f32.mrb[9].mxu1  ;;  %v707_v43 = vadd.f32 1.0, %v1500_v19 }
 0x1f5   : > { %v1504_v24 = vpop.eup %1503  ;;  %v633_v34 = vadd.f32 1.0, %v1502_v21  ;;  %1523 = vpow2.f32 %v1151_v16  ;;  %v1153_v35 = vmul.f32 -1.442695, %v591_v23 }
 0x1f6   : > { %v1506_v36 = vpop.eup %1505  ;;  %v632_v37 = vadd.f32 1.0, %v1504_v24  ;;  %1525 = vpow2.f32 %v1154_v22  ;;  %v740_v22 = vlaneseq }
 0x1f7   : > { %v1508_v39 = vpop.eup %1507  ;;  %1527 = vrcp.f32 %v633_v34  ;;  %v706_v48 = vadd.f32 1.0, %v1506_v36 }
 0x1f8   : > { %v1510_v40 = vpop.eup %1509  ;;  %1529 = vrcp.f32 %v632_v37  ;;  %v741_v23 = vand.u32 127, %v740_v22 }
 0x1f9   : > { %v1512_v41 = vpop.eup %1511  ;;  %v635_v42 = vadd.f32 1.0, %v1510_v40  ;;  %1531 = vpow2.f32 %v1153_v35 }
 0x1fa   : > { %v1514_v44 = vpop.eup %1513  ;;  %v634_v45 = vadd.f32 1.0, %v1512_v41  ;;  %1533 = vrcp.f32 %v704_v38  ;;  %vm742_vm1 = vcmp.lt.s32.totalorder %v741_v23, 64 }
 0x1fb   : > { %v1516_v46 = vpop.eup %1515  ;;  %1535 = vrcp.f32 %v635_v42  ;;  %v709_v51 = vadd.f32 1.0, %v1514_v44 }
 0x1fc   : > { %v1518_v47 = vpop.eup %1517  ;;  %1537 = vrcp.f32 %v634_v45  ;;  %v708_v58 = vadd.f32 1.0, %v1516_v46 }
 0x1fd   : > { %v1520_v49 = vpop.eup %1519  ;;  %v637_v50 = vadd.f32 1.0, %v1518_v47  ;;  %1539 = vrcp.f32 %v707_v43 }
 0x1fe   : > { %v1522_v52 = vpop.eup %1521  ;;  %v731_v53 = vadd.f32 %v1520_v49, %v1486_v62 }
 0x1ff   : > { %v1524_v54 = vpop.eup %1523  ;;  %1541 = vrcp.f32 %v637_v50  ;;  %v730_v55 = vadd.f32 %v1522_v52, %v1488_v2 }
 0x200   : > { %v1526_v56 = vpop.eup %1525  ;;  %v636_v57 = vadd.f32 1.0, %v1524_v54  ;;  %798 = vperm.xlu1 %1441, %v731_v53   ;;  %750 = vperm.xlu0 %1440, %v731_v53   ;;  %1543 = vrcp.f32 %v706_v48 }
 0x201   : > { %v1528_v59 = vpop.eup %1527  ;;  %v639_v60 = vadd.f32 1.0, %v1526_v56  ;;  %1545 = vrcp.f32 %v709_v51 }
 0x202   : > { %v1530_v61 = vpop.eup %1529  ;;  %1547 = vrcp.f32 %v636_v57  ;;  %v733_v63 = vadd.f32 %v1528_v59, %v1867_v5 }
 0x203   : > { %v1532_v0 = vpop.eup %1531  ;;  %1549 = vrcp.f32 %v639_v60  ;;  %v732_v62 = vadd.f32 %v1530_v61, %v1869_v6 }
 0x204   : > { %v1534_v1 = vpop.eup %1533  ;;  %1443 = vset.pattern.permute.xlu1 %v1648_v15  ;;  %745 = vperm.xlu0 %1440, %v730_v55   ;;  %v638_v2 = vadd.f32 1.0, %v1532_v0  ;;  %1551 = vrcp.f32 %v708_v58 }
 0x205   : > { %v1536_v3 = vpop.eup %1535  ;;  %760 = vperm.xlu1 %1443, %v733_v63  }
 0x206   : > { %v1538_v4 = vpop.eup %1537  ;;  %1553 = vrcp.f32 %v638_v2  ;;  %v735_v7 = vadd.f32 %v1536_v3, %v1508_v39 }
 0x207   : > { %v1540_v8 = vpop.eup %1539  ;;  %v734_v9 = vadd.f32 %v1538_v4, %v1534_v1 }
 0x208   : > { %1442 = vset.pattern.permute.xlu0 %v1647_v14 }
 0x209   : > { %v1542_v5 = vpop.eup %1541  ;;  %794 = vperm.xlu0 %1442, %v730_v55   ;;  %755 = vperm.xlu1 %1443, %v732_v62  }
 0x20a   : > { %v1544_v10 = vpop.eup %1543  ;;  %v737_v6 = vadd.f32 %v1542_v5, %v1540_v8 }
 0x20b   : > { %v1546_v12 = vpop.eup %1545 }
 0x20c   : > { %v1548_v13 = vpop.eup %1547 }
 0x20d   : > { %v1550_v16 = vpop.eup %1549  ;;  %806 = vperm.xlu0 %1442, %v733_v63   ;;  %1444 = vset.pattern.permute.xlu1 %v1647_v14  ;;  %v736_v17 = vadd.f32 %v1548_v13, %v1544_v10 }
 0x20e   : > { %v1552_v18 = vpop.eup %1551  ;;  %802 = vperm.xlu1 %1444, %v732_v62   ;;  %v739_v19 = vadd.f32 %v1550_v16, %v1546_v12 }
 0x210   : > { %v1554_v20 = vpop.eup %1553 }
 0x211   : > { %814 = vperm.xlu0 %1442, %v735_v7   ;;  %v738_v21 = vadd.f32 %v1554_v20, %v1552_v18 }
 0x212   : > { %1445 = vset.pattern.permute.xlu1 %v1648_v15 }
 0x213   : > { %770 = vperm.xlu1 %1445, %v735_v7  }
 0x215   : > { %1446 = vset.pattern.permute.xlu0 %v1648_v15 }
 0x216   : > { %765 = vperm.xlu0 %1446, %v734_v9  }
 0x217   : > { %1447 = vset.pattern.permute.xlu1 %v1647_v14 }
 0x218   : > { %810 = vperm.xlu1 %1447, %v734_v9  }
 0x21a   : > { %1449 = vset.pattern.permute.xlu0 %v1647_v14 }
 0x21b   : > { %822 = vperm.xlu0 %1449, %v737_v6  }
 0x21c   : > { %1448 = vset.pattern.permute.xlu1 %v1648_v15 }
 0x21d   : > { %780 = vperm.xlu1 %1448, %v737_v6  }
 0x21f   : > { %1450 = vset.pattern.permute.xlu0 %v1648_v15 }
 0x220   : > { %775 = vperm.xlu0 %1450, %v736_v17  }
 0x221   : > { %1451 = vset.pattern.permute.xlu1 %v1647_v14 }
 0x222   : > { %818 = vperm.xlu1 %1451, %v736_v17  }
 0x224   : > { %785 = vperm.xlu0 %1450, %v738_v21  }
 0x226   : > { %1452 = vset.pattern.permute.xlu1 %v1648_v15 }
 0x227   : > { %790 = vperm.xlu1 %1452, %v739_v19  }
 0x228   : > { %1454 = vset.pattern.permute.xlu0 %v1647_v14 }
 0x229   : > { %830 = vperm.xlu0 %1454, %v739_v19  }
 0x22b   : > { %1453 = vset.pattern.permute.xlu1 %v1647_v14 }
 0x22c   : > { %826 = vperm.xlu1 %1453, %v738_v21  }
 0x27f   : > { %v799_v24 = vpop.permute.xlu1 %798  ;;  %v751_v34 = vpop.permute.xlu0 %750 }
 0x280   : > { %v834_v35 = vsel %vm742_vm1, %v751_v34, %v799_v24 }
 0x281   : > { %v844_v36 = vmul.f32 %v834_v35, %v1776_v25 }
 0x283   : > { %854 = vst [vmem:[%s1889_s12 + $0x8] sm:$0xff] %v844_v36  ;;  %v746_v14 = vpop.permute.xlu0 %745 }
 0x284   : > { %v761_v15 = vpop.permute.xlu1 %760 }
 0x288   : > { %v795_v37 = vpop.permute.xlu0 %794  ;;  %v756_v38 = vpop.permute.xlu1 %755 }
 0x289   : > { %v833_v39 = vsel %vm742_vm1, %v746_v14, %v795_v37 }
 0x28a   : > { %v843_v40 = vmul.f32 %v833_v39, %v1748_v11 }
 0x28c   : > { %853 = vst [vmem:[%s1889_s12] sm:$0xff] %v843_v40  ;;  %v807_v41 = vpop.permute.xlu0 %806 }
 0x28d   : > { %v836_v25 = vsel %vm742_vm1, %v761_v15, %v807_v41  ;;  %v803_v42 = vpop.permute.xlu1 %802 }
 0x28e   : > { %v846_v43 = vmul.f32 %v836_v25, %v1784_v27  ;;  %v835_v44 = vsel %vm742_vm1, %v756_v38, %v803_v42 }
 0x28f   : > { %v845_v45 = vmul.f32 %v835_v44, %v1779_v26 }
 0x290   : > { %856 = vst [vmem:[%s1889_s12 + $0x18] sm:$0xff] %v846_v43  ;;  %v815_v46 = vpop.permute.xlu0 %814 }
 0x291   : > { %855 = vst [vmem:[%s1889_s12 + $0x10] sm:$0xff] %v845_v45 }
 0x292   : > { %v771_v47 = vpop.permute.xlu1 %770 }
 0x293   : > { %v838_v48 = vsel %vm742_vm1, %v771_v47, %v815_v46 }
 0x294   : > { %v848_v11 = vmul.f32 %v838_v48, %v1792_v29 }
 0x295   : > { %v766_v49 = vpop.permute.xlu0 %765 }
 0x296   : > { %858 = vst [vmem:[%s1889_s12 + $0x28] sm:$0xff] %v848_v11 }
 0x297   : > { %v811_v50 = vpop.permute.xlu1 %810 }
 0x298   : > { %v837_v51 = vsel %vm742_vm1, %v766_v49, %v811_v50 }
 0x299   : > { %v847_v27 = vmul.f32 %v837_v51, %v1787_v28 }
 0x29a   : > { %v823_v52 = vpop.permute.xlu0 %822 }
 0x29b   : > { %857 = vst [vmem:[%s1889_s12 + $0x20] sm:$0xff] %v847_v27 }
 0x29c   : > { %v781_v26 = vpop.permute.xlu1 %780 }
 0x29d   : > { %v840_v53 = vsel %vm742_vm1, %v781_v26, %v823_v52 }
 0x29e   : > { %v850_v54 = vmul.f32 %v840_v53, %v1800_v31 }
 0x29f   : > { %v776_v55 = vpop.permute.xlu0 %775 }
 0x2a0   : > { %860 = vst [vmem:[%s1889_s12 + $0x38] sm:$0xff] %v850_v54 }
 0x2a1   : > { %v819_v29 = vpop.permute.xlu1 %818 }
 0x2a2   : > { %v839_v56 = vsel %vm742_vm1, %v776_v55, %v819_v29 }
 0x2a3   : > { %v849_v57 = vmul.f32 %v839_v56, %v1795_v30  ;;  %v786_v58 = vpop.permute.xlu0 %785 }
 0x2a5   : > { %859 = vst [vmem:[%s1889_s12 + $0x30] sm:$0xff] %v849_v57 }
 0x2a6   : > { %v791_v59 = vpop.permute.xlu1 %790 }
 0x2a8   : > { %v831_v28 = vpop.permute.xlu0 %830 }
 0x2a9   : > { %v842_v60 = vsel %vm742_vm1, %v791_v59, %v831_v28  ;;  %869 = sbr.rel (!%p1704_p4) target bundleno = 749 (0x2ed), region = 44 }
 0x2aa   : > { %v852_v61 = vmul.f32 %v842_v60, %v1808_v33 }
 0x2ab   : > { %v827_v63 = vpop.permute.xlu1 %826 }
 0x2ac   : > { %862 = vst [vmem:[%s1889_s12 + $0x48] sm:$0xff] %v852_v61  ;;  %v841_v31 = vsel %vm742_vm1, %v786_v58, %v827_v63 }
 0x2ad   : > { %v851_v0 = vmul.f32 %v841_v31, %v1803_v32 }
 0x2af   : > { %861 = vst [vmem:[%s1889_s12 + $0x40] sm:$0xff] %v851_v0 }
 0x2b0   : > { %s1992_s18 = smov (!%p872_p8, %s871_s18), 10 }
 0x2b1   : > { %s1165_s17 = sshll.u32 %s1992_s18, 7 }
 0x2b2   : > { %p1168_p9 = scmp.eq.s32.totalorder %s1165_s17, 0 }
 0x2b3   : > { %1555 = sdivrem.u32 (!%p1168_p9), %s1992_s18, 10 }
 0x2b4   : > { %880 = sbr.rel (%p1168_p9) target bundleno = 749 (0x2ed), region = 48 }
 0x2bc   : > { %s1932_s26 = spop.drf %1555 }
 0x2bd   : > { %p1169_p10 = scmp.le.s32.totalorder %s1932_s26, 0 }
 0x2be   : > { %s1985_s21 = smov (!%p1169_p10), %s1926_s16  ;;  %s1986_s8 = smov (!%p1169_p10), %s1889_s12 }
 0x2bf   : > { %1078 = sbr.rel (%p1169_p10) target bundleno = 720 (0x2d0), region = 127  ;;  %s1941_s20 = smov (!%p1169_p10), 0  }
 0x2c0   : > { %s1943_s23 = smov (!%p1169_p10), 0  }
 0x2c6 LB: >> { %v962_v30 = vld [vmem:[%s1621_s8] sm:$0xff]  ;;  %v964_v32 = vld [vmem:[%s1621_s8 + $0x8] sm:$0xff]  ;;  %v966_v33 = vld [vmem:[%s1621_s8 + $0x10] sm:$0xff]  ;;  %s982_s27 = sadd.s32 1, %s1625_s20  ;;  %s956_s23 = sadd.s32 1, %s1629_s23   ;;  %s1629_s23 = sphi %s1943_s23, %s956_s23   ;;  %s1625_s20 = sphi %s1941_s20, %s1987_s20   ;;  %s1621_s8 = sphi %s1986_s8, %s987_s8   ;;  %s1617_s21 = sphi %s1985_s21, %s988_s21  }
 0x2c7   : >> { %963 = vst [vmem:[%s1617_s21] sm:$0xff] %v962_v30  ;;  %965 = vst [vmem:[%s1617_s21 + $0x8] sm:$0xff] %v964_v32  ;;  %v968_v62 = vld [vmem:[%s1621_s8 + $0x18] sm:$0xff]  ;;  %v970_v1 = vld [vmem:[%s1621_s8 + $0x20] sm:$0xff]  ;;  %p983_p11 = scmp.ge.s32.totalorder %s982_s27, %s1932_s26  ;;  %p955_p12 = scmp.ge.s32.totalorder %s956_s23, %s1932_s26 }
 0x2c8   : >> { %967 = vst [vmem:[%s1617_s21 + $0x10] sm:$0xff] %v966_v33  ;;  %v972_v2 = vld [vmem:[%s1621_s8 + $0x28] sm:$0xff]  ;;  %969 = vst [vmem:[%s1617_s21 + $0x18] sm:$0xff] %v968_v62  ;;  %v974_v3 = vld [vmem:[%s1621_s8 + $0x30] sm:$0xff] }
 0x2c9   : >> { %971 = vst [vmem:[%s1617_s21 + $0x20] sm:$0xff] %v970_v1  ;;  %973 = vst [vmem:[%s1617_s21 + $0x28] sm:$0xff] %v972_v2  ;;  %v976_v4 = vld [vmem:[%s1621_s8 + $0x38] sm:$0xff]  ;;  %v978_v7 = vld [vmem:[%s1621_s8 + $0x40] sm:$0xff]  ;;  %s1994_s27 = smov (%p983_p11, %s982_s27), 0  ;;  %958 = sbr.rel (!%p955_p12) target bundleno = 710 (0x2c6), region = 133 }
 0x2ca   : >> { %975 = vst [vmem:[%s1617_s21 + $0x30] sm:$0xff] %v974_v3  ;;  %977 = vst [vmem:[%s1617_s21 + $0x38] sm:$0xff] %v976_v4  ;;  %v980_v8 = vld [vmem:[%s1621_s8 + $0x48] sm:$0xff]  ;;  %s985_s28 = smul.u32 80, %s1994_s27  ;;  %s1987_s20 = smov %s1994_s27 }
 0x2cb   : >> { %979 = vst [vmem:[%s1617_s21 + $0x40] sm:$0xff] %v978_v7  ;;  %981 = vst [vmem:[%s1617_s21 + $0x48] sm:$0xff] %v980_v8 }
 0x2cc   : >> { %s987_s8 = scalar_lea.vmem %s1889_s12, %s985_s28 [#allocation2]   ;;  %s988_s21 = scalar_lea.vmem %s1926_s16, %s985_s28  }
 0x2d0 PF: > { %1557 = sdivrem.u32 %s1992_s18, 10 }
 0x2d1   : > { %s1170_s30 = smul.u32 80, %s1932_s26 }
 0x2d3   : > { %s993_s6 = scalar_lea.vmem %s1889_s12, %s1170_s30 [#allocation2]   ;;  %s995_s7 = scalar_lea.vmem %s1926_s16, %s1170_s30  }
 0x2d9   : > { %s1558_s9 = spop.drf %1557 }
 0x2da   : > { %p1172_p13 = scmp.le.s32.totalorder %s1558_s9, 0 }
 0x2db   : > { %s1631_s10 = smov (!%p1172_p13), %s995_s7   ;;  %s1635_s11 = smov (!%p1172_p13), %s993_s6  }
 0x2dc   : > { %1092 = sbr.rel (%p1172_p13) target bundleno = 749 (0x2ed), region = 138  ;;  %s1639_s15 = smov (!%p1172_p13), 0  }
 0x2dd   : > { %s1643_s24 = smov (!%p1172_p13), 0  }
 0x2e3 LB: >> { %v1005_v9 = vld [vmem:[%s1637_s11] sm:$0xff]  ;;  %s1007_s13 = sadd.s32 1, %s1641_s15  ;;  %s999_s24 = sadd.s32 1, %s1645_s24   ;;  %s1645_s24 = sphi %s1643_s24, %s999_s24   ;;  %s1641_s15 = sphi %s1639_s15, %s1640_s15   ;;  %s1637_s11 = sphi %s1635_s11, %s1012_s11   ;;  %s1633_s10 = sphi %s1631_s10, %s1013_s10  }
 0x2e4   : >> { %1006 = vst [vmem:[%s1633_s10] sm:$0xff] %v1005_v9  ;;  %p1008_p0 = scmp.ge.s32.totalorder %s1007_s13, %s1558_s9  ;;  %p998_p1 = scmp.ge.s32.totalorder %s999_s24, %s1558_s9 }
 0x2e6   : >> { %s1996_s13 = smov (%p1008_p0, %s1007_s13), 0  ;;  %1001 = sbr.rel (!%p998_p1) target bundleno = 739 (0x2e3), region = 144 }
 0x2e7   : >> { %s1173_s12 = sshll.u32 %s1996_s13, 3  ;;  %s1640_s15 = smov %s1996_s13  }
 0x2e8   : >> { %s1012_s11 = scalar_lea.vmem %s993_s6, %s1173_s12 [#allocation2]   ;;  %s1013_s10 = scalar_lea.vmem %s995_s7, %s1173_s12  }
 0x2ed PF: > { %p12_p2 = scmp.ge.s32.totalorder %s1694_s22, 4   ;;  %s1988_s18 = smov %s1609_s19 }
 0x2ee   : > { %s1989_s19 = smov %s1702_s25  ;;  %s1990_s20 = smov %s1694_s22 }
 0x2ef   :  { %14 = sbr.rel (!%p12_p2) target bundleno = 2 (0x2), region = 155 }

</bundles_post_ra>
